<compile_context>
chip_gen: v7x
topology: tpu7x:2x2x1
jax: 0.10.0
libtpu: 0.0.40
codegen_flags: <defaults>
</compile_context>

<pallas_src>
import functools

import jax
import jax.numpy as jnp
from jax.experimental import pallas as pl
from jax.experimental.pallas import tpu as pltpu


def _round_up(x, m):
    return ((x + m - 1) // m) * m


def _binary_loss_kernel(scores_ref, out_ref, acc_ref, *, n_valid, inv_denom, tile):
    """scores_ref: [2, tile] block (row 0 = target logit, row 1 = other logit)."""
    i = pl.program_id(0)

    @pl.when(i == 0)
    def _init():
        acc_ref[...] = jnp.zeros_like(acc_ref)

    blk = scores_ref[...].astype(jnp.float32)          # [2, tile]
    tgt = blk[0:1, :]                                  # [1, tile]
    oth = blk[1:2, :]                                  # [1, tile]

    # per-row loss = -log_softmax(row)[target] = softplus(other - target)
    d = oth - tgt
    sp = jnp.maximum(d, 0.0) + jnp.log1p(jnp.exp(-jnp.abs(d)))   # stable softplus

    # Mask padded lanes of the (single) ragged tile.
    idx = jax.lax.broadcasted_iota(jnp.int32, (1, tile), 1) + i * tile
    sp = jnp.where(idx < n_valid, sp, 0.0)

    acc_ref[...] += jnp.sum(sp, axis=(0, 1), keepdims=True)

    @pl.when(i == pl.num_programs(0) - 1)
    def _finalize():
        out_ref[...] = acc_ref[...] * inv_denom


def binary_loss(pos_score, neg_score, *, max_tile=32768, min_pallas_rows=0):
    """Pallas TPU implementation of BinaryLoss.forward. Returns a scalar f32.

    `min_pallas_rows` > 0 lets callers fall back to the fused pure-JAX path
    for tiny inputs where pallas_call launch overhead dominates (per review);
    default 0 so the kernel is always exercised.
    """
    np_, cp = pos_score.shape
    nn_, cn = neg_score.shape
    assert cp == 2 and cn == 2, "BinaryLoss kernel expects 2-class logits [N, 2]"

    n_total = np_ + nn_
    if n_total == 0:
        return jnp.float32(0.0)
    if n_total < min_pallas_rows:
        return binary_loss_ref(pos_score, neg_score)

    # ---- layout plumbing (no compute hoisted out of the kernel) ----
    # row 0: logit of the "target" class, row 1: the other class's logit.
    tgt = jnp.concatenate([pos_score[:, 1], neg_score[:, 0]])      # [n_total]
    oth = jnp.concatenate([pos_score[:, 0], neg_score[:, 1]])      # [n_total]
    scores = jnp.stack([tgt, oth], axis=0)                         # [2, n_total]

    tile = min(max_tile, _round_up(n_total, 128))                  # lane-dense tile
    n_pad = _round_up(n_total, tile)
    if n_pad != n_total:
        scores = jnp.pad(scores, ((0, 0), (0, n_pad - n_total)))
    num_tiles = n_pad // tile

    kernel = functools.partial(
        _binary_loss_kernel,
        n_valid=n_total,
        inv_denom=1.0 / float(n_total),
        tile=tile,
    )

    out = pl.pallas_call(
        kernel,
        out_shape=jax.ShapeDtypeStruct((1, 1), jnp.float32),
        grid_spec=pltpu.PrefetchScalarGridSpec(
            num_scalar_prefetch=0,
            grid=(num_tiles,),
            # [2, tile] block: sublane dim equals the full array dim (2),
            # lane dim is a multiple of 128 -> lane-dense, double-buffered.
            in_specs=[pl.BlockSpec((2, tile), lambda i: (0, i))],
            out_specs=pl.BlockSpec((1, 1), lambda i: (0, 0)),
            scratch_shapes=[pltpu.VMEM((1, 1), jnp.float32)],
        ),
        compiler_params=pltpu.CompilerParams(
            dimension_semantics=("arbitrary",)),   # N axis is a reduction
    )(scores)
    return out[0, 0]


def binary_loss_ref(pos_score, neg_score):
    """Pure-JAX reference for correctness checking."""
    pos_loss = -jax.nn.log_softmax(pos_score.astype(jnp.float32), axis=1)[:, 1]
    neg_loss = -jax.nn.log_softmax(neg_score.astype(jnp.float32), axis=1)[:, 0]
    return (pos_loss.sum() + neg_loss.sum()) / (pos_loss.shape[0] + neg_loss.shape[0])


if __name__ == "__main__":
    key = jax.random.PRNGKey(0)
    k1, k2 = jax.random.split(key)
    # Binary scores: [N, 2] logits (pos vs. neg proposals).
    pos_score = jax.random.normal(k1, (8, 2), dtype=jnp.float32)
    neg_score = jax.random.normal(k2, (16, 2), dtype=jnp.float32)

    loss = jax.block_until_ready(binary_loss(pos_score, neg_score))
    ref = jax.block_until_ready(binary_loss_ref(pos_score, neg_score))

    assert jnp.allclose(loss, ref, rtol=1e-5, atol=1e-5), (loss, ref)
    print("KERNEL_OK")
</pallas_src>

<mosaic_0001>
module attributes {stable_mosaic.version = 11 : i64} {
  func.func @_binary_loss_kernel(%arg0: i32, %arg1: memref<2x128xf32, #tpu.memory_space<vmem>>, %arg2: memref<1x1xf32, #tpu.memory_space<vmem>>, %arg3: memref<1x1xf32, #tpu.memory_space<vmem>>) attributes {dimension_semantics = [#tpu.dimension_semantics<arbitrary>], iteration_bounds = array<i64: 1>, scalar_prefetch = 0 : i64, scratch_operands = 1 : i64, tpu.core_type = #tpu.core_type<tc>, window_params = [{transform_indices = @transform_0, window_bounds = array<i64: 2, 128>}, {pipeline_mode = #tpu.pipeline_mode<synchronous>, transform_indices = @transform_1, window_bounds = array<i64: 1, 1>}]} {
    %c0_i32 = arith.constant 0 : i32
    %0 = arith.cmpi eq, %arg0, %c0_i32 : i32
    %1 = arith.extui %0 : i1 to i32
    %c0_i32_0 = arith.constant 0 : i32
    %2 = arith.cmpi ne, %1, %c0_i32_0 : i32
    scf.if %2 {
      %cst_11 = arith.constant 0.000000e+00 : f32
      %34 = vector.broadcast %cst_11 : f32 to vector<1x1xf32>
      %c0_12 = arith.constant 0 : index
      %c0_13 = arith.constant 0 : index
      %35 = vector.load %arg3[%c0_12, %c0_13] : memref<1x1xf32, #tpu.memory_space<vmem>>, vector<1x1xf32>
      tpu.vector_store %arg3[%c0_12, %c0_13], %34 {strides = array<i32>} : memref<1x1xf32, #tpu.memory_space<vmem>>, vector<1x1xf32>,
    } else {
    }
    %c0 = arith.constant 0 : index
    %c0_1 = arith.constant 0 : index
    %3 = vector.load %arg1[%c0, %c0_1] : memref<2x128xf32, #tpu.memory_space<vmem>>, vector<2x128xf32>
    %4 = vector.extract_strided_slice %3 {offsets = [0, 0], sizes = [1, 128], strides = [1, 1]} : vector<2x128xf32> to vector<1x128xf32>
    %5 = vector.extract_strided_slice %3 {offsets = [1, 0], sizes = [1, 128], strides = [1, 1]} : vector<2x128xf32> to vector<1x128xf32>
    %6 = arith.subf %5, %4 : vector<1x128xf32>
    %cst = arith.constant 0.000000e+00 : f32
    %7 = vector.broadcast %cst : f32 to vector<1x128xf32>
    %8 = arith.maximumf %6, %7 : vector<1x128xf32>
    %9 = math.absf %6 : vector<1x128xf32>
    %cst_2 = arith.constant 0.000000e+00 : f32
    %10 = vector.broadcast %cst_2 : f32 to vector<1x128xf32>
    %11 = arith.subf %10, %9 : vector<1x128xf32>
    %12 = math.exp %11 : vector<1x128xf32>
    %13 = math.log1p %12 : vector<1x128xf32>
    %14 = arith.addf %8, %13 : vector<1x128xf32>
    %15 = tpu.iota {dimensions = array<i32: 1>} : vector<1x128xi32>
    %c128_i32 = arith.constant 128 : i32
    %16 = arith.muli %arg0, %c128_i32 : i32
    %17 = vector.broadcast %16 : i32 to vector<1x128xi32>
    %18 = arith.addi %15, %17 : vector<1x128xi32>
    %c24_i32 = arith.constant 24 : i32
    %19 = vector.broadcast %c24_i32 : i32 to vector<1x128xi32>
    %20 = arith.cmpi slt, %18, %19 : vector<1x128xi32>
    %cst_3 = arith.constant 0.000000e+00 : f32
    %21 = vector.broadcast %cst_3 : f32 to vector<1x128xf32>
    %22 = arith.select %20, %14, %21 : vector<1x128xi1>, vector<1x128xf32>
    %c0_4 = arith.constant 0 : index
    %c0_5 = arith.constant 0 : index
    %23 = vector.load %arg3[%c0_4, %c0_5] : memref<1x1xf32, #tpu.memory_space<vmem>>, vector<1x1xf32>
    %24 = vector.shape_cast %22 : vector<1x128xf32> to vector<1x1x128xf32>
    %cst_6 = arith.constant dense<0.000000e+00> : vector<1xf32>
    %25 = vector.multi_reduction <add>, %24, %cst_6 [1, 2] : vector<1x1x128xf32> to vector<1xf32>
    %26 = vector.shape_cast %25 : vector<1xf32> to vector<1x1x1xf32>
    %27 = vector.extract %26[0, 0, 0] : f32 from vector<1x1x1xf32>
    %28 = vector.broadcast %27 : f32 to vector<1x1xf32>
    %29 = arith.addf %23, %28 : vector<1x1xf32>
    %c0_7 = arith.constant 0 : index
    %c0_8 = arith.constant 0 : index
    %30 = vector.load %arg3[%c0_7, %c0_8] : memref<1x1xf32, #tpu.memory_space<vmem>>, vector<1x1xf32>
    tpu.vector_store %arg3[%c0_7, %c0_8], %29 {strides = array<i32>} : memref<1x1xf32, #tpu.memory_space<vmem>>, vector<1x1xf32>,
    %c0_i32_9 = arith.constant 0 : i32
    %31 = arith.cmpi eq, %arg0, %c0_i32_9 : i32
    %32 = arith.extui %31 : i1 to i32
    %c0_i32_10 = arith.constant 0 : i32
    %33 = arith.cmpi ne, %32, %c0_i32_10 : i32
    scf.if %33 {
      %c0_11 = arith.constant 0 : index
      %c0_12 = arith.constant 0 : index
      %34 = vector.load %arg3[%c0_11, %c0_12] : memref<1x1xf32, #tpu.memory_space<vmem>>, vector<1x1xf32>
      %cst_13 = arith.constant 0.0416666679 : f32
      %35 = vector.broadcast %cst_13 : f32 to vector<1x1xf32>
      %36 = arith.mulf %34, %35 : vector<1x1xf32>
      %c0_14 = arith.constant 0 : index
      %c0_15 = arith.constant 0 : index
      %37 = vector.load %arg2[%c0_14, %c0_15] : memref<1x1xf32, #tpu.memory_space<vmem>>, vector<1x1xf32>
      tpu.vector_store %arg2[%c0_14, %c0_15], %36 {strides = array<i32>} : memref<1x1xf32, #tpu.memory_space<vmem>>, vector<1x1xf32>,
    } else {
    }
    return
  }
  func.func @transform_0(%arg0: i32) -> (i32, i32) {
    %c0_i32 = arith.constant 0 : i32
    %c0_i32_0 = arith.constant 0 : i32
    return %c0_i32, %arg0 : i32, i32
  }
  func.func @transform_1(%arg0: i32) -> (i32, i32) {
    %c0_i32 = arith.constant 0 : i32
    %c0_i32_0 = arith.constant 0 : i32
    %c0_i32_1 = arith.constant 0 : i32
    return %c0_i32, %c0_i32_0 : i32, i32
  }
}

</mosaic_0001>

<bundles_post_ra>
// kernel: tpu_custom_call.1
= control target key start
LH: loop header
LB: loop body
LE: loop exit
PB: predicated region body
PF: predicated region fallthrough
CT: control target
= control target key end

     0   :  { %6 = vsyncpa [#allocation4], 0  ;;  %s191_s0 = inlined_call_operand.hbm [shape: f32[2,128], index: 0, kind: input, shape index: {}]   ;;  %s192_s1 = inlined_call_operand.hbm [shape: f32[1,1], index: 1, kind: output, shape index: {}]  }
   0x1   :  { %7 = vsyncpa [#allocation5], 0  ;;  %s151_s6 = smov [#allocation3]   ;;  %s103_s10 = scalar_lea.hbm %s191_s0, 32 }
   0x2   :  { %s14_s7 = sshll.u32 %s151_s6, 4  ;;  %p104_p0 = scmp.ne.s32.totalorder %s191_s0, %s103_s10  ;;  %s15_s7 = int_to_ptr.vmem [resolvable:$true] %s14_s7 }
   0x3   :  { %p107_p1 = scmp.lt.u32.totalorder %s103_s10, %s191_s0 }
   0x5   :  { %p109_p2 = pnand %p107_p1, %p104_p0 }
   0x7   :  { %112 = shalt.err (!%p109_p2)
}
   0x8   :  { %s113_s15 = scalar_lea.vmem %s15_s7, 32  ;;  %p118_p4 = scmp.lt.s32.totalorder %s15_s7, %s15_s7 }
   0x9   :  { %p114_p3 = scmp.ne.s32.totalorder %s15_s7, %s113_s15  ;;  %p119_p5 = scmp.lt.s32.totalorder %s113_s15, %s113_s15 }
   0xb   :  { %p120_p6 = por %p119_p5, %p118_p4 }
   0xd   :  { %p121_p7 = pnand %p120_p6, %p114_p3 }
   0xf   :  { %124 = shalt.err (!%p121_p7)
}
  0x10   :  { %17 = dma.hbm_to_vmem [thread:$0]  %s191_s0, 32, %s15_s7, [#allocation4]  }
  0x11   :  { %147 = dma.done.wait [#allocation4], 32  }
  0x12   :  { %148 = vsyncadd [#allocation4], 4294967264  ;;  %v27_v0 = vld [vmem:[#allocation3] sm:$0x3]  ;;  %v47_v10 = vlaneseq  ;;  %vm58_vm2 = vcmask 1040384   ;;  %vm25_vm3 = vcmask 0  }
  0x13   :  { %v29_v1 = vrot.slane %v27_v0, 7  ;;  %v152_v22 = vmov 0.0   ;;  %s153_s18 = smov [#allocation6]  }
  0x14   :  { %v48_v13 = vand.u32 127, %v47_v10  ;;  %26 = vst.msk [vmem:[#allocation2] sm:$0x1] %vm25_vm3, %v152_v22  ;;  %s85_s19 = sshll.u32 %s153_s18, 4  ;;  %s86_s19 = int_to_ptr.vmem [resolvable:$true] %s85_s19 }
  0x15   :  { %v31_v2 = vsub.f32 %v27_v0, %v29_v1  ;;  %s125_s20 = scalar_lea.vmem %s86_s19, 16  ;;  %s129_s21 = scalar_lea.vmem %s86_s19, 32 }
  0x16   :  { %vm52_vm1 = vcmp.lt.s32.totalorder %v48_v13, 24  ;;  %p126_p8 = scmp.ne.s32.totalorder %s86_s19, %s125_s20  ;;  %p130_p9 = scmp.lt.s32.totalorder %s86_s19, %s86_s19 }
  0x17   :  { %v33_v3 = vand.u32 2147483647, %v31_v2  ;;  %v32_v15 = vmax.f32 %v31_v2, 0.0  ;;  %p131_p10 = scmp.lt.s32.totalorder %s129_s21, %s125_s20 }
  0x19   :  { %v34_v4 = vsub.f32 0.0, %v33_v3  ;;  %p132_p11 = por %p131_p10, %p130_p9 }
  0x1b   :  { %v35_v5 = vmul.f32 1.442695, %v34_v4  ;;  %v54_v30 = vld [vmem:[#allocation2] sm:$0x1]  ;;  %p133_p12 = pnand %p132_p11, %p126_p8 }
  0x1d   :  { %99 = vpow2.f32 %v35_v5 }
  0x27   :  { %v100_v6 = vpop.eup %99 }
  0x28   :  { %v37_v7 = vadd.f32 1.0, %v100_v6  ;;  %v40_v8 = vmul.f32 -0.5, %v100_v6  ;;  %v43_v11 = vand.u32 2147483647, %v100_v6 }
  0x2a   :  { %101 = vlog2.f32 %v37_v7  ;;  %v41_v9 = vadd.f32 1.0, %v40_v8  ;;  %vm44_vm0 = vcmp.lt.f32.partialorder %v43_v11, 0.0004427343 }
  0x2c   :  { %v42_v12 = vmul.f32 %v100_v6, %v41_v9 }
  0x34   :  { %v102_v14 = vpop.eup %101 }
  0x35   :  { %v39_v16 = vmul.f32 0.6931472, %v102_v14 }
  0x37   :  { %v45_v17 = vsel %vm44_vm0, %v42_v12, %v39_v16 }
  0x38   :  { %v46_v18 = vadd.f32 %v45_v17, %v32_v15 }
  0x3a   :  { %v53_v19 = vsel %vm52_vm1, %v46_v18, 0.0 }
  0x3b   :  { %v56_v20 = vrot.slane %v53_v19, 1 }
  0x3d   :  { %v59_v21 = vsel %vm58_vm2, %v56_v20, 0.0 }
  0x3e   :  { %60 = vadd.xlane.f32.xlu0 %v59_v21 }
  0xcb   :  { %v61_v23 = vpop.xlane.xlu0 %60 }
  0xcc   :  { %v62_v24 = vrot.slane %v61_v23, 4 }
  0xce   :  { %v63_v25 = vadd.f32 %v62_v24, %v61_v23 }
  0xd0   :  { %v64_v26 = vrot.slane %v63_v25, 2 }
  0xd2   :  { %v65_v27 = vadd.f32 %v64_v26, %v63_v25 }
  0xd4   :  { %v66_v28 = vrot.slane %v65_v27, 1 }
  0xd6   :  { %v67_v29 = vadd.f32 %v66_v28, %v65_v27 }
  0xd8   :  { %94 = vpush %v67_v29 }
 0x109   :  { %s95_s0 = spop %94 }
 0x10a   :  { %v69_v31 = vstv %s95_s0 }
 0x10b   :  { %v70_v32 = vadd.f32 %v69_v31, %v54_v30 }
 0x10d   :  { %72 = vst.msk [vmem:[#allocation2] sm:$0x1] %vm25_vm3, %v70_v32 }
 0x114   :  { %v76_v33 = vld [vmem:[#allocation2] sm:$0x1] }
 0x115   :  { %v77_v34 = vmul.f32 0.041666668, %v76_v33 }
 0x117   :  { %78 = vst.msk [vmem:[#allocation6] sm:$0x1] %vm25_vm3, %v77_v34 }
 0x118   :  { %136 = shalt.err (!%p133_p12)
}
 0x119   :  { %s137_s24 = scalar_lea.hbm %s192_s1, 16 }
 0x11a   :  { %p138_p13 = scmp.ne.s32.totalorder %s192_s1, %s137_s24  ;;  %p141_p0 = scmp.lt.u32.totalorder %s137_s24, %s192_s1 }
 0x11c   :  { %p143_p1 = pnand %p141_p0, %p138_p13 }
 0x11e   :  { %146 = shalt.err (!%p143_p1)
}
 0x11f   :  { %88 = dma.vmem_to_hbm [thread:$0]  %s86_s19, 16, %s192_s1, [#allocation5]  }
 0x120   :  { %149 = dma.done.wait [#allocation5], 16  }
 0x121   :  { %150 = vsyncadd [#allocation5], 4294967280 }
 0x122   :  { %92 = vsyncpa [#allocation4], 1 }
 0x123   :  { %93 = vsyncpa [#allocation5], 1 }

</bundles_post_ra>
